<compile_context>
chip_gen: v7x
topology: tpu7x:2x2x1
jax: 0.10.0
libtpu: 0.0.40
codegen_flags: <defaults>
</compile_context>

<pallas_src>
import jax
import jax.numpy as jnp
from jax.experimental import pallas as pl
from jax.experimental.pallas import tpu as pltpu

_LANES = 512        # lane width of each dense row (multiple of 128)
_SUBLANES = 8       # sublane granularity


def _linear_kernel(w_ref, b_ref, xT_ref, o_ref):
    # w_ref: (3,) f32 in SMEM, b_ref: (1,) f32 in SMEM.
    # xT_ref: (3, tile_rows, L) f32 in VMEM -- xT_ref[k] is a fully dense
    #         (tile_rows, L) slab holding feature k for tile_rows*L rows.
    # o_ref : (tile_rows, L) f32 in VMEM (dense output slab).
    x0 = xT_ref[0]
    x1 = xT_ref[1]
    x2 = xT_ref[2]
    # Pure VPU elementwise: scalar * vector mul/add in f32 (v5e-safe).
    y = x0 * w_ref[0] + x1 * w_ref[1] + x2 * w_ref[2] + b_ref[0]
    o_ref[...] = y.astype(o_ref.dtype)


def _round_up(a, m):
    return ((a + m - 1) // m) * m


def _plan_tiles(batch, max_tile_b):
    """Pick (tile_rows, total_rows, num_tiles) for the (rows, L) dense view."""
    rows_min = _round_up(max(1, -(-batch // _LANES)), _SUBLANES)
    max_tile_rows = max(_SUBLANES,
                        (max_tile_b // _LANES) // _SUBLANES * _SUBLANES)
    tile_rows = min(max_tile_rows, rows_min)
    # Keep >= 2 tiles (v7x dual-TC / megacore) when a single tile would
    # otherwise swallow a reasonably large problem.
    if rows_min <= tile_rows and rows_min >= 2 * _SUBLANES:
        half = _round_up(rows_min // 2, _SUBLANES)
        if half >= 64:                      # >= 32K batch elems per tile
            tile_rows = half
    total_rows = _round_up(rows_min, tile_rows)
    return tile_rows, total_rows, total_rows // tile_rows


def multivariable_linear_regression_fm(x_fm, weight, bias, *,
                                       max_tile_b=262144):
    """Feature-major entry point (no transpose pre-pass).

    x_fm: (3, B) f32, weight: (1, 3) f32, bias: (1,) f32 -> (B, 1) f32.
    """
    K, B = x_fm.shape
    assert K == 3 and weight.shape == (1, 3) and bias.shape == (1,)

    w = weight.reshape(3).astype(jnp.float32)   # SMEM scalars
    b = bias.reshape(1).astype(jnp.float32)

    tile_rows, total_rows, num_tiles = _plan_tiles(B, max_tile_b)
    b_pad = total_rows * _LANES

    x_fm = x_fm.astype(jnp.float32)
    if b_pad != B:
        # Padded rows compute only the bias and are sliced off below.
        x_fm = jnp.pad(x_fm, ((0, 0), (0, b_pad - B)))
    # Free row-major view: (3, b_pad) -> (3, total_rows, L).
    x3 = x_fm.reshape(3, total_rows, _LANES)

    out = pl.pallas_call(
        _linear_kernel,
        out_shape=jax.ShapeDtypeStruct((total_rows, _LANES), jnp.float32),
        grid=(num_tiles,),
        in_specs=[
            pl.BlockSpec(memory_space=pltpu.MemorySpace.SMEM),           # w (3,)
            pl.BlockSpec(memory_space=pltpu.MemorySpace.SMEM),           # b (1,)
            pl.BlockSpec((3, tile_rows, _LANES), lambda i: (0, i, 0)),   # x^T
        ],
        out_specs=pl.BlockSpec((tile_rows, _LANES), lambda i: (i, 0)),
        compiler_params=pltpu.CompilerParams(
            dimension_semantics=("parallel",)),                          # megacore / v7x
    )(w, b, x3)

    # Back to PyTorch's (B, 1) output convention; drop the pad rows.
    return out.reshape(b_pad)[:B].reshape(B, 1)


def multivariable_linear_regression(x, weight, bias, *, max_tile_b=262144):
    """PyTorch-layout entry point: x (B, 3) f32 -> (B, 1) f32.

    NOTE: transposes x once on the XLA side (one extra HBM pass).  For large
    B, keep x feature-major upstream and call multivariable_linear_regression_fm.
    """
    B, K = x.shape
    assert K == 3
    return multivariable_linear_regression_fm(x.T, weight, bias,
                                              max_tile_b=max_tile_b)


if __name__ == "__main__":
    key = jax.random.PRNGKey(0)
    kx, kw, kb = jax.random.split(key, 3)

    B = 8
    x = jax.random.normal(kx, (B, 3), dtype=jnp.float32)

    # Deterministic parameter init (mimics nn.Linear(3, 1) shapes).
    bound = 1.0 / jnp.sqrt(3.0)
    weight = jax.random.uniform(kw, (1, 3), jnp.float32, -bound, bound)
    bias = jax.random.uniform(kb, (1,), jnp.float32, -bound, bound)

    out = multivariable_linear_regression(x, weight, bias)
    out = jax.block_until_ready(out)

    out_fm = multivariable_linear_regression_fm(x.T, weight, bias)
    out_fm = jax.block_until_ready(out_fm)

    # Reference check in plain JAX (same semantics as torch.nn.Linear).
    ref = x @ weight.T + bias
    assert out.shape == (B, 1)
    assert jnp.allclose(out, ref, atol=1e-5, rtol=1e-5)
    assert jnp.allclose(out_fm, ref, atol=1e-5, rtol=1e-5)

    print("KERNEL_OK")
</pallas_src>

<mosaic_0001>
module attributes {stable_mosaic.version = 11 : i64} {
  func.func @_linear_kernel(%arg0: i32, %arg1: memref<3xf32, #tpu.memory_space<smem>>, %arg2: memref<1xf32, #tpu.memory_space<smem>>, %arg3: memref<3x8x512xf32, #tpu.memory_space<vmem>>, %arg4: memref<8x512xf32, #tpu.memory_space<vmem>>) attributes {dimension_semantics = [#tpu.dimension_semantics<parallel>], iteration_bounds = array<i64: 1>, scalar_prefetch = 0 : i64, scratch_operands = 0 : i64, tpu.core_type = #tpu.core_type<tc>, window_params = [{transform_indices = @transform_0, window_bounds = array<i64: 3>}, {transform_indices = @transform_1, window_bounds = array<i64: 1>}, {transform_indices = @transform_2, window_bounds = array<i64: 3, 8, 512>}, {transform_indices = @transform_3, window_bounds = array<i64: 8, 512>}]} {
    %c0 = arith.constant 0 : index
    %c0_0 = arith.constant 0 : index
    %c0_1 = arith.constant 0 : index
    %0 = vector.load %arg3[%c0, %c0_0, %c0_1] : memref<3x8x512xf32, #tpu.memory_space<vmem>>, vector<1x8x512xf32>
    %1 = vector.shape_cast %0 : vector<1x8x512xf32> to vector<8x512xf32>
    %c1 = arith.constant 1 : index
    %c0_2 = arith.constant 0 : index
    %c0_3 = arith.constant 0 : index
    %2 = vector.load %arg3[%c1, %c0_2, %c0_3] : memref<3x8x512xf32, #tpu.memory_space<vmem>>, vector<1x8x512xf32>
    %3 = vector.shape_cast %2 : vector<1x8x512xf32> to vector<8x512xf32>
    %c2 = arith.constant 2 : index
    %c0_4 = arith.constant 0 : index
    %c0_5 = arith.constant 0 : index
    %4 = vector.load %arg3[%c2, %c0_4, %c0_5] : memref<3x8x512xf32, #tpu.memory_space<vmem>>, vector<1x8x512xf32>
    %5 = vector.shape_cast %4 : vector<1x8x512xf32> to vector<8x512xf32>
    %c0_6 = arith.constant 0 : index
    %6 = memref.load %arg1[%c0_6] : memref<3xf32, #tpu.memory_space<smem>>
    %7 = vector.broadcast %6 : f32 to vector<8x512xf32>
    %8 = arith.mulf %1, %7 : vector<8x512xf32>
    %c1_7 = arith.constant 1 : index
    %9 = memref.load %arg1[%c1_7] : memref<3xf32, #tpu.memory_space<smem>>
    %10 = vector.broadcast %9 : f32 to vector<8x512xf32>
    %11 = arith.mulf %3, %10 : vector<8x512xf32>
    %12 = arith.addf %8, %11 : vector<8x512xf32>
    %c2_8 = arith.constant 2 : index
    %13 = memref.load %arg1[%c2_8] : memref<3xf32, #tpu.memory_space<smem>>
    %14 = vector.broadcast %13 : f32 to vector<8x512xf32>
    %15 = arith.mulf %5, %14 : vector<8x512xf32>
    %16 = arith.addf %12, %15 : vector<8x512xf32>
    %c0_9 = arith.constant 0 : index
    %17 = memref.load %arg2[%c0_9] : memref<1xf32, #tpu.memory_space<smem>>
    %18 = vector.broadcast %17 : f32 to vector<8x512xf32>
    %19 = arith.addf %16, %18 : vector<8x512xf32>
    %c0_10 = arith.constant 0 : index
    %c0_11 = arith.constant 0 : index
    %20 = vector.load %arg4[%c0_10, %c0_11] : memref<8x512xf32, #tpu.memory_space<vmem>>, vector<8x512xf32>
    tpu.vector_store %arg4[%c0_10, %c0_11], %19 {strides = array<i32>} : memref<8x512xf32, #tpu.memory_space<vmem>>, vector<8x512xf32>,
    return
  }
  func.func @transform_0(%arg0: i32) -> i32 {
    %c0_i32 = arith.constant 0 : i32
    %c0_i32_0 = arith.constant 0 : i32
    return %c0_i32 : i32
  }
  func.func @transform_1(%arg0: i32) -> i32 {
    %c0_i32 = arith.constant 0 : i32
    %c0_i32_0 = arith.constant 0 : i32
    return %c0_i32 : i32
  }
  func.func @transform_2(%arg0: i32) -> (i32, i32, i32) {
    %c0_i32 = arith.constant 0 : i32
    %c0_i32_0 = arith.constant 0 : i32
    %c0_i32_1 = arith.constant 0 : i32
    return %c0_i32, %arg0, %c0_i32_0 : i32, i32, i32
  }
  func.func @transform_3(%arg0: i32) -> (i32, i32) {
    %c0_i32 = arith.constant 0 : i32
    %c0_i32_0 = arith.constant 0 : i32
    return %arg0, %c0_i32 : i32, i32
  }
}

</mosaic_0001>

<bundles_post_ra>
// kernel: tpu_custom_call.1
= control target key start
LH: loop header
LB: loop body
LE: loop exit
PB: predicated region body
PF: predicated region fallthrough
CT: control target
= control target key end

     0   :  { %9 = vsyncpa [#allocation6], 0  ;;  %s233_s0 = inlined_call_operand.vmem [shape: f32[3], index: 0, kind: input, shape index: {}]   ;;  %s234_s1 = inlined_call_operand.<no memory space> [shape: f32[1], index: 1, kind: input, shape index: {}]   ;;  %s235_s2 = inlined_call_operand.hbm [shape: f32[3,8,512], index: 2, kind: input, shape index: {}]   ;;  %s236_s3 = inlined_call_operand.hbm [shape: f32[8,512], index: 3, kind: output, shape index: {}]  }
   0x1   :  { %10 = vsyncpa [#allocation4], 0 }
   0x2   :  { %11 = vsyncpa [#allocation5], 0  ;;  %s18_s14 = sshll.u32 %s233_s0, 4  ;;  %s19_s14 = int_to_ptr.vmem [resolvable:$true] %s18_s14 }
   0x3   :  { %s116_s15 = scalar_lea.vmem %s19_s14, 16  ;;  %p121_p1 = scmp.lt.s32.totalorder %s19_s14, %s19_s14 }
   0x4   :  { %p117_p0 = scmp.ne.s32.totalorder %s19_s14, %s116_s15  ;;  %p122_p2 = scmp.lt.s32.totalorder %s116_s15, %s116_s15 }
   0x6   :  { %p123_p3 = por %p122_p2, %p121_p1 }
   0x8   :  { %p124_p4 = pnand %p123_p3, %p117_p0 }
   0xa   :  { %127 = shalt.err (!%p124_p4)
}
   0xb   :  { %s178_s16 = smov [#allocation3]   ;;  %s179_s17 = smov [#allocation7]  }
   0xc   :  { %21 = dma.vmem_to_smem %s19_s14, 16, %s178_s16, [#allocation6]  }
   0xd   :  { %s29_s18 = sshll.u32 %s179_s17, 4  ;;  %s128_s21 = scalar_lea.hbm %s235_s2, 1536  ;;  %s30_s18 = int_to_ptr.vmem [resolvable:$true] %s29_s18 }
   0xe   :  { %p129_p5 = scmp.ne.s32.totalorder %s235_s2, %s128_s21  ;;  %p132_p6 = scmp.lt.u32.totalorder %s128_s21, %s235_s2 }
  0x10   :  { %p134_p7 = pnand %p132_p6, %p129_p5 }
  0x12   :  { %137 = shalt.err (!%p134_p7)
}
  0x13   :  { %s138_s25 = scalar_lea.vmem %s30_s18, 1536  ;;  %p143_p9 = scmp.lt.s32.totalorder %s30_s18, %s30_s18 }
  0x14   :  { %p139_p8 = scmp.ne.s32.totalorder %s30_s18, %s138_s25  ;;  %p144_p10 = scmp.lt.s32.totalorder %s138_s25, %s138_s25 }
  0x16   :  { %p145_p11 = por %p144_p10, %p143_p9 }
  0x18   :  { %p146_p12 = pnand %p145_p11, %p139_p8 }
  0x1a   :  { %149 = shalt.err (!%p146_p12)
}
  0x1b   :  { %s180_s26 = smov 512   ;;  %s181_s27 = smov 32  }
  0x1c   :  { %35 = dma.hbm_to_vmem [thread:$0]  %s235_s2, 1536, %s30_s18, [#allocation4], %s180_s26, %s180_s26, %s181_s27  }
  0x1d   :  { %172 = dma.done.wait [#allocation6], 16  }
  0x1e   :  { %173 = vsyncadd [#allocation6], 4294967280 }
  0x1f   :  { %174 = dma.done.wait [#allocation4], 1536  }
  0x20   :  { %175 = vsyncadd [#allocation4], 4294965760 }
  0x21   :  { %42 = sfence }
  0x22   :  { %s57_s30 = sld [smem:[#allocation3]]  ;;  %s109_s4 = sld [smem:[#allocation3 + $0x1]]  ;;  %v43_v0 = vld [vmem:[#allocation7] sm:$0xff]  ;;  %v44_v3 = vld [vmem:[#allocation7 + $0x8] sm:$0xff]  ;;  %v45_v6 = vld [vmem:[#allocation7 + $0x10] sm:$0xff]  ;;  %v84_v29 = vstv %s234_s1 }
  0x23   :  { %s110_s5 = sld [smem:[#allocation3 + $0x2]]  ;;  %v48_v1 = vld [vmem:[#allocation7 + $0x20] sm:$0xff]  ;;  %v49_v4 = vld [vmem:[#allocation7 + $0x28] sm:$0xff]  ;;  %v50_v8 = vld [vmem:[#allocation7 + $0x30] sm:$0xff]  ;;  %s182_s7 = smov [#allocation8]  }
  0x24   :  { %v53_v2 = vld [vmem:[#allocation7 + $0x40] sm:$0xff]  ;;  %v54_v5 = vld [vmem:[#allocation7 + $0x48] sm:$0xff]  ;;  %v55_v9 = vld [vmem:[#allocation7 + $0x50] sm:$0xff]  ;;  %s99_s8 = sshll.u32 %s182_s7, 4  ;;  %s100_s8 = int_to_ptr.vmem [resolvable:$true] %s99_s8 }
  0x25   :  { %v46_v10 = vld [vmem:[#allocation7 + $0x18] sm:$0xff]  ;;  %s150_s9 = scalar_lea.vmem %s100_s8, 512  ;;  %p155_p0 = scmp.lt.s32.totalorder %s100_s8, %s100_s8 }
  0x26   :  { %v51_v15 = vld [vmem:[#allocation7 + $0x38] sm:$0xff]  ;;  %p151_p13 = scmp.ne.s32.totalorder %s100_s8, %s150_s9  ;;  %p156_p1 = scmp.lt.s32.totalorder %s150_s9, %s150_s9 }
  0x27   :  { %v56_v16 = vld [vmem:[#allocation7 + $0x58] sm:$0xff] }
  0x28   :  { %v58_v7 = vstv %s57_s30  ;;  %v64_v12 = vstv %s109_s4  ;;  %p157_p2 = por %p156_p1, %p155_p0 }
  0x29   :  { %v59_v11 = vmul.f32 %v58_v7, %v43_v0  ;;  %v74_v13 = vstv %s110_s5  ;;  %v60_v14 = vmul.f32 %v58_v7, %v44_v3  ;;  %v65_v17 = vmul.f32 %v64_v12, %v48_v1 }
  0x2a   :  { %v75_v18 = vmul.f32 %v74_v13, %v53_v2  ;;  %v66_v19 = vmul.f32 %v64_v12, %v49_v4  ;;  %v76_v20 = vmul.f32 %v74_v13, %v54_v5  ;;  %v61_v21 = vmul.f32 %v58_v7, %v45_v6  ;;  %p158_p3 = pnand %p157_p2, %p151_p13 }
  0x2b   :  { %v67_v22 = vmul.f32 %v64_v12, %v50_v8  ;;  %v77_v23 = vmul.f32 %v74_v13, %v55_v9  ;;  %v62_v24 = vmul.f32 %v58_v7, %v46_v10  ;;  %v69_v25 = vadd.f32 %v65_v17, %v59_v11 }
  0x2c   :  { %v70_v26 = vadd.f32 %v66_v19, %v60_v14  ;;  %v68_v27 = vmul.f32 %v64_v12, %v51_v15  ;;  %v78_v28 = vmul.f32 %v74_v13, %v56_v16 }
  0x2d   :  { %v71_v30 = vadd.f32 %v67_v22, %v61_v21  ;;  %v79_v31 = vadd.f32 %v75_v18, %v69_v25 }
  0x2e   :  { %v80_v32 = vadd.f32 %v76_v20, %v70_v26  ;;  %v72_v33 = vadd.f32 %v68_v27, %v62_v24 }
  0x2f   :  { %v81_v34 = vadd.f32 %v77_v23, %v71_v30  ;;  %v85_v35 = vadd.f32 %v84_v29, %v79_v31 }
  0x30   :  { %v86_v36 = vadd.f32 %v84_v29, %v80_v32  ;;  %v82_v37 = vadd.f32 %v78_v28, %v72_v33 }
  0x31   :  { %v87_v38 = vadd.f32 %v84_v29, %v81_v34  ;;  %89 = vst [vmem:[#allocation8] sm:$0xff] %v85_v35 }
  0x32   :  { %90 = vst [vmem:[#allocation8 + $0x8] sm:$0xff] %v86_v36  ;;  %v88_v39 = vadd.f32 %v84_v29, %v82_v37 }
  0x33   :  { %91 = vst [vmem:[#allocation8 + $0x10] sm:$0xff] %v87_v38 }
  0x34   :  { %92 = vst [vmem:[#allocation8 + $0x18] sm:$0xff] %v88_v39 }
  0x35   :  { %161 = shalt.err (!%p158_p3)
}
  0x36   :  { %s162_s11 = scalar_lea.hbm %s236_s3, 512 }
  0x37   :  { %p163_p4 = scmp.ne.s32.totalorder %s236_s3, %s162_s11  ;;  %p166_p5 = scmp.lt.u32.totalorder %s162_s11, %s236_s3 }
  0x39   :  { %p168_p6 = pnand %p166_p5, %p163_p4 }
  0x3b   :  { %171 = shalt.err (!%p168_p6)
}
  0x3c   :  { %102 = dma.vmem_to_hbm [thread:$0]  %s100_s8, 512, %s236_s3, [#allocation5]  }
  0x3d   :  { %176 = dma.done.wait [#allocation5], 512  }
  0x3e   :  { %177 = vsyncadd [#allocation5], 4294966784 }
  0x3f   :  { %106 = vsyncpa [#allocation4], 1 }
  0x40   :  { %107 = vsyncpa [#allocation5], 1 }
  0x41   :  { %108 = vsyncpa [#allocation6], 1 }

</bundles_post_ra>
